<compile_context>
chip_gen: v7x
topology: tpu7x:2x2x1
jax: 0.10.0
libtpu: 0.0.40
codegen_flags: <defaults>
</compile_context>

<pallas_src>
import functools

import numpy as np
import jax
import jax.numpy as jnp
from jax import lax
from jax.experimental import pallas as pl
from jax.experimental.pallas import tpu as pltpu


def _choose_images_per_block(n, c):
    """Images per grid step (Nb).

    Rb = Nb*C block rows must be a multiple of 8 (full f32 sublanes) unless the
    block covers the whole (N*C,) axis.  Nb is also the MXU-flop redundancy
    factor of the block-diagonal stacked-tap matmul, so Rb is capped to keep
    the f32 matmul comfortably under the HBM roofline.
    """
    cap = 64 if c < 8 else 128
    best = None
    for nb in range(1, n + 1):
        if n % nb:
            continue
        rb = nb * c
        if rb % 8 == 0 and rb <= max(cap, c):
            best = nb
    return best if best is not None else n   # whole array: always a legal block


def _build_tap_masks(H, W, rows):
    """masks[k, r, p] = 1.0 iff tap k's source pixel for flat pixel p lies inside
    the image; pre-broadcast over the Rb block rows (no in-kernel broadcasts)."""
    HW = H * W
    h = np.arange(HW) // W
    w = np.arange(HW) % W
    m = np.zeros((9, HW), np.float32)
    for k in range(9):
        dh, dw = k // 3 - 1, k % 3 - 1
        m[k] = ((h + dh >= 0) & (h + dh < H) &
                (w + dw >= 0) & (w + dw < W)).astype(np.float32)
    return jnp.asarray(np.ascontiguousarray(
        np.broadcast_to(m[:, None, :], (9, rows, HW))))


def _mono_res_kernel(x_ref, w_ref, params_ref, mask_ref, o_ref, s_ref, *, H, W, rb):
    """One block = Nb whole images, Rb = Nb*C rows x H*W lanes.

    x_ref:      (Rb, HW)     input rows (image-major, channel-minor)
    w_ref:      (Rb, 9*Rb)   stacked-tap conv weight, block-diagonal over images
    params_ref: (3, Rb, 1)   per-row [bn_scale, bn_shift, prelu_alpha]
    mask_ref:   (9, Rb, HW)  per-tap "source pixel is inside the image" mask
    o_ref:      (Rb, HW)     output rows = x + conv3x3(prelu(bn(x)))
    s_ref:      (9*Rb, HW)   VMEM scratch: stacked shifted+masked activations
    """
    HW = H * W
    x = x_ref[...]

    # Folded BatchNorm affine + PReLU, element-wise on full (8,128) vregs.
    z = x * params_ref[0] + params_ref[1]
    act = jnp.where(z >= 0.0, z, params_ref[2] * z)

    # Stack the 9 shifted+masked activations: S[k*Rb + r, p] = act[r, p + d_k]
    # if that source pixel is inside the image, else 0 (mask also kills the
    # wrap-around lanes of the roll).  Lane rolls go to the XLU; the mask
    # multiply is one VPU op per tap.
    for k in range(9):
        dh, dw = k // 3 - 1, k % 3 - 1
        d = dh * W + dw
        if d == 0:
            s_ref[pl.ds(k * rb, rb), :] = act              # centre tap: always valid
        else:
            s_ref[pl.ds(k * rb, rb), :] = (
                pltpu.roll(act, shift=(-d) % HW, axis=1) * mask_ref[k])

    # Channel mixing for all Nb images at once: one MXU matmul, then residual.
    conv = jnp.dot(w_ref[...], s_ref[...], preferred_element_type=jnp.float32)
    o_ref[...] = (x + conv).astype(o_ref.dtype)


def mono_res_2d(x, bn_gamma, bn_beta, bn_mean, bn_var, prelu_alpha, conv_weight,
                *, eps=1e-5):
    """MonoRes2d forward: x + Conv2d(C, C, 3, 1, 1, bias=False)(PReLU(BN(x))).

    x: (N, C, H, W) NCHW.  conv_weight: (C, C, 3, 3) PyTorch OIHW layout.
    bn_mean / bn_var are the statistics used for normalization (batch stats for
    training-mode forward, running stats for eval).
    """
    N, C, H, W = x.shape
    Co, Ci, KH, KW = conv_weight.shape
    assert Co == C and Ci == C and KH == 3 and KW == 3
    HW = H * W

    nb = _choose_images_per_block(N, C)      # images per block
    rb = nb * C                              # rows per block
    n_blocks = N // nb

    # Fold BatchNorm into per-channel scale/shift; tile per block row and merge
    # scale/shift/alpha into a single (3, Rb, 1) operand.
    scale_c = bn_gamma.astype(jnp.float32) / jnp.sqrt(bn_var.astype(jnp.float32) + eps)
    shift_c = bn_beta.astype(jnp.float32) - bn_mean.astype(jnp.float32) * scale_c
    a = jnp.asarray(prelu_alpha, jnp.float32).reshape(-1)
    if a.shape[0] == 1:                      # nn.PReLU() default: one shared param
        a = jnp.broadcast_to(a, (C,))
    params = jnp.stack([jnp.tile(scale_c, nb),
                        jnp.tile(shift_c, nb),
                        jnp.tile(a, nb)])[:, :, None]               # (3, Rb, 1)

    # Stacked-tap conv weight, block-diagonal over the Nb images in a block:
    #   wbig[n*C+co, k*Rb + n*C+ci] = conv_weight[co, ci, kh, kw],  k = kh*3+kw.
    w9 = jnp.transpose(conv_weight.astype(jnp.float32), (2, 3, 0, 1)).reshape(9, C, C)
    eye = jnp.eye(nb, dtype=jnp.float32)
    wbig = jnp.einsum('koc,nm->knomc', w9, eye).reshape(9, rb, rb)
    wbig = jnp.transpose(wbig, (1, 0, 2)).reshape(rb, 9 * rb)       # (Rb, 9*Rb)

    masks = _build_tap_masks(H, W, rb)                              # (9, Rb, HW)

    # Free metadata reshape of contiguous NCHW -> (N*C, HW): no HBM transpose;
    # lane axis is HW (a multiple of 128 here -> unmasked stores).
    x2 = x.reshape(N * C, HW).astype(jnp.float32)

    flops = n_blocks * 2 * rb * (9 * rb) * HW + 7 * N * C * HW
    bytes_accessed = 4 * (2 * N * C * HW + rb * 9 * rb + 9 * rb * HW + 3 * rb)

    out = pl.pallas_call(
        functools.partial(_mono_res_kernel, H=H, W=W, rb=rb),
        out_shape=jax.ShapeDtypeStruct((N * C, HW), jnp.float32),
        grid_spec=pltpu.PrefetchScalarGridSpec(
            num_scalar_prefetch=0,
            grid=(n_blocks,),
            in_specs=[
                pl.BlockSpec((rb, HW), lambda i: (i, 0)),        # x rows
                pl.BlockSpec((rb, 9 * rb), lambda i: (0, 0)),    # stacked-tap weight
                pl.BlockSpec((3, rb, 1), lambda i: (0, 0, 0)),   # bn/prelu params
                pl.BlockSpec((9, rb, HW), lambda i: (0, 0, 0)),  # tap masks
            ],
            out_specs=pl.BlockSpec((rb, HW), lambda i: (i, 0)),
            scratch_shapes=[pltpu.VMEM((9 * rb, HW), jnp.float32)],
        ),
        compiler_params=pltpu.CompilerParams(
            dimension_semantics=("parallel",),
            vmem_limit_bytes=32 * 1024 * 1024,
        ),
        cost_estimate=pl.CostEstimate(
            flops=flops, transcendentals=0, bytes_accessed=bytes_accessed),
    )(x2, wbig, params, masks)

    return out.reshape(N, C, H, W)


def _reference(x, bn_gamma, bn_beta, bn_mean, bn_var, prelu_alpha, conv_weight,
               eps=1e-5):
    C = x.shape[1]
    scale = bn_gamma / jnp.sqrt(bn_var + eps)
    z = ((x - bn_mean[None, :, None, None]) * scale[None, :, None, None]
         + bn_beta[None, :, None, None])
    a = jnp.asarray(prelu_alpha, jnp.float32).reshape(-1)
    if a.shape[0] == 1:
        a = jnp.broadcast_to(a, (C,))
    act = jnp.where(z >= 0.0, z, a[None, :, None, None] * z)
    y = lax.conv_general_dilated(
        act, conv_weight.astype(jnp.float32),
        window_strides=(1, 1), padding=((1, 1), (1, 1)),
        dimension_numbers=("NCHW", "OIHW", "NCHW"))
    return x + y


if __name__ == "__main__":
    key = jax.random.PRNGKey(0)
    kx, kw, kg, kb = jax.random.split(key, 4)

    N, C, H, W = 2, 4, 16, 16
    x = jax.random.normal(kx, (N, C, H, W), dtype=jnp.float32)
    conv_w = 0.1 * jax.random.normal(kw, (C, C, 3, 3), dtype=jnp.float32)
    bn_gamma = 1.0 + 0.1 * jax.random.normal(kg, (C,), dtype=jnp.float32)
    bn_beta = 0.1 * jax.random.normal(kb, (C,), dtype=jnp.float32)
    prelu_alpha = jnp.asarray([0.25], dtype=jnp.float32)   # nn.PReLU() default init

    # nn.BatchNorm2d in (default) training mode normalizes with per-batch
    # statistics (biased variance); eval mode would pass running stats instead.
    bn_mean = jnp.mean(x, axis=(0, 2, 3))
    bn_var = jnp.var(x, axis=(0, 2, 3))

    out = jax.block_until_ready(
        mono_res_2d(x, bn_gamma, bn_beta, bn_mean, bn_var, prelu_alpha, conv_w))
    ref = jax.block_until_ready(
        _reference(x, bn_gamma, bn_beta, bn_mean, bn_var, prelu_alpha, conv_w))

    assert out.shape == (N, C, H, W), out.shape
    max_err = float(jnp.max(jnp.abs(out - ref)))
    assert jnp.allclose(out, ref, atol=1e-4, rtol=1e-4), max_err

    print("KERNEL_OK")
</pallas_src>

<mosaic_0001>
module attributes {stable_mosaic.version = 11 : i64} {
  func.func @_mono_res_kernel(%arg0: i32, %arg1: memref<8x256xf32, #tpu.memory_space<vmem>>, %arg2: memref<8x72xf32, #tpu.memory_space<vmem>>, %arg3: memref<3x8x1xf32, #tpu.memory_space<vmem>>, %arg4: memref<9x8x256xf32, #tpu.memory_space<vmem>>, %arg5: memref<8x256xf32, #tpu.memory_space<vmem>>, %arg6: memref<72x256xf32, #tpu.memory_space<vmem>>) attributes {dimension_semantics = [#tpu.dimension_semantics<parallel>], iteration_bounds = array<i64: 1>, scalar_prefetch = 0 : i64, scratch_operands = 1 : i64, tpu.core_type = #tpu.core_type<tc>, window_params = [{transform_indices = @transform_0, window_bounds = array<i64: 8, 256>}, {pipeline_mode = #tpu.pipeline_mode<synchronous>, transform_indices = @transform_1, window_bounds = array<i64: 8, 72>}, {pipeline_mode = #tpu.pipeline_mode<synchronous>, transform_indices = @transform_2, window_bounds = array<i64: 3, 8, 1>}, {pipeline_mode = #tpu.pipeline_mode<synchronous>, transform_indices = @transform_3, window_bounds = array<i64: 9, 8, 256>}, {transform_indices = @transform_4, window_bounds = array<i64: 8, 256>}]} {
    %c0 = arith.constant 0 : index
    %c0_0 = arith.constant 0 : index
    %0 = vector.load %arg1[%c0, %c0_0] : memref<8x256xf32, #tpu.memory_space<vmem>>, vector<8x256xf32>
    %c0_1 = arith.constant 0 : index
    %c0_2 = arith.constant 0 : index
    %c0_3 = arith.constant 0 : index
    %1 = vector.load %arg3[%c0_1, %c0_2, %c0_3] : memref<3x8x1xf32, #tpu.memory_space<vmem>>, vector<1x8x1xf32>
    %2 = vector.shape_cast %1 : vector<1x8x1xf32> to vector<8x1xf32>
    %3 = vector.broadcast %2 : vector<8x1xf32> to vector<8x256xf32>
    %4 = arith.mulf %0, %3 : vector<8x256xf32>
    %c1 = arith.constant 1 : index
    %c0_4 = arith.constant 0 : index
    %c0_5 = arith.constant 0 : index
    %5 = vector.load %arg3[%c1, %c0_4, %c0_5] : memref<3x8x1xf32, #tpu.memory_space<vmem>>, vector<1x8x1xf32>
    %6 = vector.shape_cast %5 : vector<1x8x1xf32> to vector<8x1xf32>
    %7 = vector.broadcast %6 : vector<8x1xf32> to vector<8x256xf32>
    %8 = arith.addf %4, %7 : vector<8x256xf32>
    %cst = arith.constant 0.000000e+00 : f32
    %9 = vector.broadcast %cst : f32 to vector<8x256xf32>
    %10 = arith.cmpf oge, %8, %9 : vector<8x256xf32>
    %c2 = arith.constant 2 : index
    %c0_6 = arith.constant 0 : index
    %c0_7 = arith.constant 0 : index
    %11 = vector.load %arg3[%c2, %c0_6, %c0_7] : memref<3x8x1xf32, #tpu.memory_space<vmem>>, vector<1x8x1xf32>
    %12 = vector.shape_cast %11 : vector<1x8x1xf32> to vector<8x1xf32>
    %13 = vector.broadcast %12 : vector<8x1xf32> to vector<8x256xf32>
    %14 = arith.mulf %13, %8 : vector<8x256xf32>
    %15 = arith.select %10, %8, %14 : vector<8x256xi1>, vector<8x256xf32>
    %c17_i32 = arith.constant 17 : i32
    %16 = tpu.dynamic_rotate %15 by %c17_i32 dim 1 : vector<8x256xf32>, i32 -> vector<8x256xf32>
    %c0_8 = arith.constant 0 : index
    %c0_9 = arith.constant 0 : index
    %c0_10 = arith.constant 0 : index
    %17 = vector.load %arg4[%c0_8, %c0_9, %c0_10] : memref<9x8x256xf32, #tpu.memory_space<vmem>>, vector<1x8x256xf32>
    %18 = vector.shape_cast %17 : vector<1x8x256xf32> to vector<8x256xf32>
    %19 = arith.mulf %16, %18 : vector<8x256xf32>
    %c0_11 = arith.constant 0 : index
    %c0_12 = arith.constant 0 : index
    %20 = vector.load %arg6[%c0_11, %c0_12] : memref<72x256xf32, #tpu.memory_space<vmem>>, vector<8x256xf32>
    tpu.vector_store %arg6[%c0_11, %c0_12], %19 {strides = array<i32>} : memref<72x256xf32, #tpu.memory_space<vmem>>, vector<8x256xf32>,
    %c16_i32 = arith.constant 16 : i32
    %21 = tpu.dynamic_rotate %15 by %c16_i32 dim 1 : vector<8x256xf32>, i32 -> vector<8x256xf32>
    %c1_13 = arith.constant 1 : index
    %c0_14 = arith.constant 0 : index
    %c0_15 = arith.constant 0 : index
    %22 = vector.load %arg4[%c1_13, %c0_14, %c0_15] : memref<9x8x256xf32, #tpu.memory_space<vmem>>, vector<1x8x256xf32>
    %23 = vector.shape_cast %22 : vector<1x8x256xf32> to vector<8x256xf32>
    %24 = arith.mulf %21, %23 : vector<8x256xf32>
    %c8 = arith.constant 8 : index
    %c0_16 = arith.constant 0 : index
    %25 = vector.load %arg6[%c8, %c0_16] : memref<72x256xf32, #tpu.memory_space<vmem>>, vector<8x256xf32>
    tpu.vector_store %arg6[%c8, %c0_16], %24 {strides = array<i32>} : memref<72x256xf32, #tpu.memory_space<vmem>>, vector<8x256xf32>,
    %c15_i32 = arith.constant 15 : i32
    %26 = tpu.dynamic_rotate %15 by %c15_i32 dim 1 : vector<8x256xf32>, i32 -> vector<8x256xf32>
    %c2_17 = arith.constant 2 : index
    %c0_18 = arith.constant 0 : index
    %c0_19 = arith.constant 0 : index
    %27 = vector.load %arg4[%c2_17, %c0_18, %c0_19] : memref<9x8x256xf32, #tpu.memory_space<vmem>>, vector<1x8x256xf32>
    %28 = vector.shape_cast %27 : vector<1x8x256xf32> to vector<8x256xf32>
    %29 = arith.mulf %26, %28 : vector<8x256xf32>
    %c16 = arith.constant 16 : index
    %c0_20 = arith.constant 0 : index
    %30 = vector.load %arg6[%c16, %c0_20] : memref<72x256xf32, #tpu.memory_space<vmem>>, vector<8x256xf32>
    tpu.vector_store %arg6[%c16, %c0_20], %29 {strides = array<i32>} : memref<72x256xf32, #tpu.memory_space<vmem>>, vector<8x256xf32>,
    %c1_i32 = arith.constant 1 : i32
    %31 = tpu.dynamic_rotate %15 by %c1_i32 dim 1 : vector<8x256xf32>, i32 -> vector<8x256xf32>
    %c3 = arith.constant 3 : index
    %c0_21 = arith.constant 0 : index
    %c0_22 = arith.constant 0 : index
    %32 = vector.load %arg4[%c3, %c0_21, %c0_22] : memref<9x8x256xf32, #tpu.memory_space<vmem>>, vector<1x8x256xf32>
    %33 = vector.shape_cast %32 : vector<1x8x256xf32> to vector<8x256xf32>
    %34 = arith.mulf %31, %33 : vector<8x256xf32>
    %c24 = arith.constant 24 : index
    %c0_23 = arith.constant 0 : index
    %35 = vector.load %arg6[%c24, %c0_23] : memref<72x256xf32, #tpu.memory_space<vmem>>, vector<8x256xf32>
    tpu.vector_store %arg6[%c24, %c0_23], %34 {strides = array<i32>} : memref<72x256xf32, #tpu.memory_space<vmem>>, vector<8x256xf32>,
    %c32 = arith.constant 32 : index
    %c0_24 = arith.constant 0 : index
    %36 = vector.load %arg6[%c32, %c0_24] : memref<72x256xf32, #tpu.memory_space<vmem>>, vector<8x256xf32>
    tpu.vector_store %arg6[%c32, %c0_24], %15 {strides = array<i32>} : memref<72x256xf32, #tpu.memory_space<vmem>>, vector<8x256xf32>,
    %c255_i32 = arith.constant 255 : i32
    %37 = tpu.dynamic_rotate %15 by %c255_i32 dim 1 : vector<8x256xf32>, i32 -> vector<8x256xf32>
    %c5 = arith.constant 5 : index
    %c0_25 = arith.constant 0 : index
    %c0_26 = arith.constant 0 : index
    %38 = vector.load %arg4[%c5, %c0_25, %c0_26] : memref<9x8x256xf32, #tpu.memory_space<vmem>>, vector<1x8x256xf32>
    %39 = vector.shape_cast %38 : vector<1x8x256xf32> to vector<8x256xf32>
    %40 = arith.mulf %37, %39 : vector<8x256xf32>
    %c40 = arith.constant 40 : index
    %c0_27 = arith.constant 0 : index
    %41 = vector.load %arg6[%c40, %c0_27] : memref<72x256xf32, #tpu.memory_space<vmem>>, vector<8x256xf32>
    tpu.vector_store %arg6[%c40, %c0_27], %40 {strides = array<i32>} : memref<72x256xf32, #tpu.memory_space<vmem>>, vector<8x256xf32>,
    %c241_i32 = arith.constant 241 : i32
    %42 = tpu.dynamic_rotate %15 by %c241_i32 dim 1 : vector<8x256xf32>, i32 -> vector<8x256xf32>
    %c6 = arith.constant 6 : index
    %c0_28 = arith.constant 0 : index
    %c0_29 = arith.constant 0 : index
    %43 = vector.load %arg4[%c6, %c0_28, %c0_29] : memref<9x8x256xf32, #tpu.memory_space<vmem>>, vector<1x8x256xf32>
    %44 = vector.shape_cast %43 : vector<1x8x256xf32> to vector<8x256xf32>
    %45 = arith.mulf %42, %44 : vector<8x256xf32>
    %c48 = arith.constant 48 : index
    %c0_30 = arith.constant 0 : index
    %46 = vector.load %arg6[%c48, %c0_30] : memref<72x256xf32, #tpu.memory_space<vmem>>, vector<8x256xf32>
    tpu.vector_store %arg6[%c48, %c0_30], %45 {strides = array<i32>} : memref<72x256xf32, #tpu.memory_space<vmem>>, vector<8x256xf32>,
    %c240_i32 = arith.constant 240 : i32
    %47 = tpu.dynamic_rotate %15 by %c240_i32 dim 1 : vector<8x256xf32>, i32 -> vector<8x256xf32>
    %c7 = arith.constant 7 : index
    %c0_31 = arith.constant 0 : index
    %c0_32 = arith.constant 0 : index
    %48 = vector.load %arg4[%c7, %c0_31, %c0_32] : memref<9x8x256xf32, #tpu.memory_space<vmem>>, vector<1x8x256xf32>
    %49 = vector.shape_cast %48 : vector<1x8x256xf32> to vector<8x256xf32>
    %50 = arith.mulf %47, %49 : vector<8x256xf32>
    %c56 = arith.constant 56 : index
    %c0_33 = arith.constant 0 : index
    %51 = vector.load %arg6[%c56, %c0_33] : memref<72x256xf32, #tpu.memory_space<vmem>>, vector<8x256xf32>
    tpu.vector_store %arg6[%c56, %c0_33], %50 {strides = array<i32>} : memref<72x256xf32, #tpu.memory_space<vmem>>, vector<8x256xf32>,
    %c239_i32 = arith.constant 239 : i32
    %52 = tpu.dynamic_rotate %15 by %c239_i32 dim 1 : vector<8x256xf32>, i32 -> vector<8x256xf32>
    %c8_34 = arith.constant 8 : index
    %c0_35 = arith.constant 0 : index
    %c0_36 = arith.constant 0 : index
    %53 = vector.load %arg4[%c8_34, %c0_35, %c0_36] : memref<9x8x256xf32, #tpu.memory_space<vmem>>, vector<1x8x256xf32>
    %54 = vector.shape_cast %53 : vector<1x8x256xf32> to vector<8x256xf32>
    %55 = arith.mulf %52, %54 : vector<8x256xf32>
    %c64 = arith.constant 64 : index
    %c0_37 = arith.constant 0 : index
    %56 = vector.load %arg6[%c64, %c0_37] : memref<72x256xf32, #tpu.memory_space<vmem>>, vector<8x256xf32>
    tpu.vector_store %arg6[%c64, %c0_37], %55 {strides = array<i32>} : memref<72x256xf32, #tpu.memory_space<vmem>>, vector<8x256xf32>,
    %c0_38 = arith.constant 0 : index
    %c0_39 = arith.constant 0 : index
    %57 = vector.load %arg2[%c0_38, %c0_39] : memref<8x72xf32, #tpu.memory_space<vmem>>, vector<8x72xf32>
    %c0_40 = arith.constant 0 : index
    %c0_41 = arith.constant 0 : index
    %58 = vector.load %arg6[%c0_40, %c0_41] : memref<72x256xf32, #tpu.memory_space<vmem>>, vector<72x256xf32>
    %cst_42 = arith.constant dense<0.000000e+00> : vector<8x256xf32>
    %59 = tpu.matmul %57, %58, %cst_42 {dimension_numbers = #tpu.dot_dimension_numbers<[1], [0], [0], [1], [0, 0, 1, 1], [], []>} : vector<8x72xf32>, vector<72x256xf32>, vector<8x256xf32> -> vector<8x256xf32>
    %60 = arith.addf %0, %59 : vector<8x256xf32>
    %c0_43 = arith.constant 0 : index
    %c0_44 = arith.constant 0 : index
    %61 = vector.load %arg5[%c0_43, %c0_44] : memref<8x256xf32, #tpu.memory_space<vmem>>, vector<8x256xf32>
    tpu.vector_store %arg5[%c0_43, %c0_44], %60 {strides = array<i32>} : memref<8x256xf32, #tpu.memory_space<vmem>>, vector<8x256xf32>,
    return
  }
  func.func @transform_0(%arg0: i32) -> (i32, i32) {
    %c0_i32 = arith.constant 0 : i32
    %c0_i32_0 = arith.constant 0 : i32
    return %arg0, %c0_i32 : i32, i32
  }
  func.func @transform_1(%arg0: i32) -> (i32, i32) {
    %c0_i32 = arith.constant 0 : i32
    %c0_i32_0 = arith.constant 0 : i32
    %c0_i32_1 = arith.constant 0 : i32
    return %c0_i32, %c0_i32_0 : i32, i32
  }
  func.func @transform_2(%arg0: i32) -> (i32, i32, i32) {
    %c0_i32 = arith.constant 0 : i32
    %c0_i32_0 = arith.constant 0 : i32
    %c0_i32_1 = arith.constant 0 : i32
    %c0_i32_2 = arith.constant 0 : i32
    return %c0_i32, %c0_i32_0, %c0_i32_1 : i32, i32, i32
  }
  func.func @transform_3(%arg0: i32) -> (i32, i32, i32) {
    %c0_i32 = arith.constant 0 : i32
    %c0_i32_0 = arith.constant 0 : i32
    %c0_i32_1 = arith.constant 0 : i32
    %c0_i32_2 = arith.constant 0 : i32
    return %c0_i32, %c0_i32_0, %c0_i32_1 : i32, i32, i32
  }
  func.func @transform_4(%arg0: i32) -> (i32, i32) {
    %c0_i32 = arith.constant 0 : i32
    %c0_i32_0 = arith.constant 0 : i32
    return %arg0, %c0_i32 : i32, i32
  }
}

</mosaic_0001>

<bundles_post_ra>
// kernel: tpu_custom_call.1
= control target key start
LH: loop header
LB: loop body
LE: loop exit
PB: predicated region body
PF: predicated region fallthrough
CT: control target
= control target key end

     0   :  { %9 = vsyncpa [#allocation4], 0  ;;  %s497_s0 = inlined_call_operand.vmem [shape: f32[8,256], index: 0, kind: input, shape index: {}]   ;;  %s498_s1 = inlined_call_operand.vmem [shape: f32[8,72], index: 1, kind: input, shape index: {}]   ;;  %s499_s2 = inlined_call_operand.vmem [shape: f32[3,8,1], index: 2, kind: input, shape index: {}]   ;;  %s500_s3 = inlined_call_operand.hbm [shape: f32[9,8,256], index: 3, kind: input, shape index: {}]   ;;  %s501_s4 = inlined_call_operand.hbm [shape: f32[8,256], index: 4, kind: output, shape index: {}]  }
   0x1   :  { %10 = vsyncpa [#allocation5], 0  ;;  %s374_s15 = smov [#allocation3]   ;;  %s326_s19 = scalar_lea.hbm %s500_s3, 2304 }
   0x2   :  { %s22_s16 = sshll.u32 %s374_s15, 4  ;;  %p327_p0 = scmp.ne.s32.totalorder %s500_s3, %s326_s19  ;;  %s23_s16 = int_to_ptr.vmem [resolvable:$true] %s22_s16 }
   0x3   :  { %p330_p1 = scmp.lt.u32.totalorder %s326_s19, %s500_s3 }
   0x5   :  { %p332_p2 = pnand %p330_p1, %p327_p0 }
   0x7   :  { %335 = shalt.err (!%p332_p2)
}
   0x8   :  { %s336_s24 = scalar_lea.vmem %s23_s16, 2304  ;;  %p341_p4 = scmp.lt.s32.totalorder %s23_s16, %s23_s16 }
   0x9   :  { %p337_p3 = scmp.ne.s32.totalorder %s23_s16, %s336_s24  ;;  %p342_p5 = scmp.lt.s32.totalorder %s336_s24, %s336_s24 }
   0xb   :  { %p343_p6 = por %p342_p5, %p341_p4 }
   0xd   :  { %p344_p7 = pnand %p343_p6, %p337_p3 }
   0xf   :  { %347 = shalt.err (!%p344_p7)
}
  0x10   :  { %s375_s25 = smov 256   ;;  %s376_s26 = smov 16  }
  0x11   :  { %28 = dma.hbm_to_vmem [thread:$0]  %s500_s3, 2304, %s23_s16, [#allocation4], %s375_s25, %s375_s25, %s376_s26  }
  0x12   :  { %370 = dma.done.wait [#allocation4], 2304  }
  0x13   :  { %371 = vsyncadd [#allocation4], 4294964992  ;;  %v377_v0 = vmov 0   ;;  %v34_v1 = vld [vmem:[%s499_s2] sm:$0xff]  ;;  %v293_v2 = vld [vmem:[%s499_s2 + $0x10] sm:$0xff]  ;;  %s380_s12 = smov 1   ;;  %v68_v18 = vlaneseq }
  0x14   :  { %324 = vset.pattern.permute.xlu0 %v377_v0  ;;  %325 = vset.pattern.permute.xlu1 %v377_v0  ;;  %v292_v3 = vld [vmem:[%s499_s2 + $0x8] sm:$0xff]  ;;  %v437_v5 = vld [vmem:[%s497_s0] sm:$0xff]  ;;  %s378_s2 = smov 17   ;;  %s381_s13 = smov 127   ;;  %v383_v17 = vmov 0.0   ;;  %v87_v25 = vld [vmem:[#allocation3 + $0x10] sm:$0xff] }
  0x15   :  { %37 = vperm.xlu0 %324, %v34_v1   ;;  %57 = vperm.xlu1 %325, %v293_v2   ;;  %v442_v6 = vld [vmem:[%s497_s0 + $0x8] sm:$0xff]  ;;  %s379_s0 = smov 15   ;;  %s382_s14 = smov 113   ;;  %v468_v19 = vand.u32 127, %v68_v18  ;;  %v73_v22 = vld [vmem:[#allocation3] sm:$0xff]  ;;  %v88_v27 = vld [vmem:[#allocation3 + $0x18] sm:$0xff] }
  0x16   :  { %266 = vmatprep.mubr.f32.mxu0 %v383_v17  ;;  %s384_s15 = smov 112   ;;  %s385_s16 = smov 111   ;;  %v74_v26 = vld [vmem:[#allocation3 + $0x8] sm:$0xff]  ;;  %v101_v40 = vld [vmem:[#allocation3 + $0x20] sm:$0xff]  ;;  %v115_v44 = vld [vmem:[#allocation3 + $0x30] sm:$0xff]  ;;  %vm198_vm10 = vcmask 588800  }
  0x17   :  { %vm70_vm2 = vcmp.lt.s32.totalorder %v468_v19, 17  ;;  %vm83_vm3 = vcmp.lt.s32.totalorder %v468_v19, 16  ;;  %vm97_vm4 = vcmp.lt.s32.totalorder %v468_v19, 15  ;;  %vm111_vm5 = vcmp.lt.s32.totalorder %v468_v19, 1  ;;  %v102_v41 = vld [vmem:[#allocation3 + $0x28] sm:$0xff]  ;;  %v116_v45 = vld [vmem:[#allocation3 + $0x38] sm:$0xff] }
  0x18   :  { %vm127_vm6 = vcmp.lt.s32.totalorder %v468_v19, 127  ;;  %v131_v54 = vld [vmem:[#allocation3 + $0x50] sm:$0xff]  ;;  %v132_v55 = vld [vmem:[#allocation3 + $0x58] sm:$0xff]  ;;  %vm141_vm7 = vcmp.lt.s32.totalorder %v468_v19, 113  ;;  %vm155_vm8 = vcmp.lt.s32.totalorder %v468_v19, 112  ;;  %vm169_vm9 = vcmp.lt.s32.totalorder %v468_v19, 111 }
  0x19   :  { %46 = vperm.xlu0 %324, %v292_v3   ;;  %v179_v19 = vld [vmem:[%s498_s1] sm:$0xff]  ;;  %s386_s19 = smov [#allocation6]  }
  0x1a   :  { %s283_s20 = sshll.u32 %s386_s19, 4  ;;  %s284_s20 = int_to_ptr.vmem [resolvable:$true] %s283_s20 }
  0x1b   :  { %s348_s21 = scalar_lea.vmem %s284_s20, 256  ;;  %p353_p9 = scmp.lt.s32.totalorder %s284_s20, %s284_s20 }
  0x1c   :  { %p349_p8 = scmp.ne.s32.totalorder %s284_s20, %s348_s21  ;;  %p354_p10 = scmp.lt.s32.totalorder %s348_s21, %s348_s21 }
  0x1e   :  { %p355_p11 = por %p354_p10, %p353_p9 }
  0x20   :  { %p356_p12 = pnand %p355_p11, %p349_p8 }
  0x94   :  { %v38_v4 = vpop.permute.xlu0 %37  ;;  %v58_v10 = vpop.permute.xlu1 %57 }
  0x95   :  { %v40_v7 = vmul.f32 %v38_v4, %v437_v5  ;;  %v41_v8 = vmul.f32 %v38_v4, %v442_v6  ;;  %v145_v4 = vld [vmem:[#allocation3 + $0x60] sm:$0xff] }
  0x98   :  { %v47_v9 = vpop.permute.xlu0 %46 }
  0x99   :  { %v49_v11 = vadd.f32 %v47_v9, %v40_v7  ;;  %v50_v12 = vadd.f32 %v47_v9, %v41_v8  ;;  %v146_v7 = vld [vmem:[#allocation3 + $0x68] sm:$0xff] }
  0x9b   :  { %vm51_vm0 = vcmp.ge.f32.partialorder %v49_v11, 0.0  ;;  %vm52_vm1 = vcmp.ge.f32.partialorder %v50_v12, 0.0  ;;  %v60_v13 = vmul.f32 %v58_v10, %v49_v11  ;;  %v61_v14 = vmul.f32 %v58_v10, %v50_v12  ;;  %v159_v10 = vld [vmem:[#allocation3 + $0x70] sm:$0xff] }
  0x9d   :  { %v446_v15 = vsel %vm51_vm0, %v49_v11, %v60_v13  ;;  %v448_v16 = vsel %vm52_vm1, %v50_v12, %v61_v14  ;;  %v160_v11 = vld [vmem:[#allocation3 + $0x78] sm:$0xff] }
  0x9e   :  { %66 = vrot.lane.b32.xlu0 %v448_v16, %s378_s2  ;;  %64 = vrot.lane.b32.xlu1 %v446_v15, %s378_s2 }
  0xa2   :  { %81 = vrot.lane.b32.xlu0 %v448_v16, %s376_s26  ;;  %79 = vrot.lane.b32.xlu1 %v446_v15, %s376_s26 }
  0xa6   :  { %95 = vrot.lane.b32.xlu0 %v448_v16, %s379_s0  ;;  %93 = vrot.lane.b32.xlu1 %v446_v15, %s379_s0 }
  0xaa   :  { %109 = vrot.lane.b32.xlu0 %v448_v16, %s380_s12  ;;  %107 = vrot.lane.b32.xlu1 %v446_v15, %s380_s12 }
  0xae   :  { %125 = vrot.lane.b32.xlu0 %v448_v16, %s381_s13  ;;  %123 = vrot.lane.b32.xlu1 %v446_v15, %s381_s13 }
  0xb2   :  { %139 = vrot.lane.b32.xlu0 %v448_v16, %s382_s14  ;;  %137 = vrot.lane.b32.xlu1 %v446_v15, %s382_s14 }
  0xb6   :  { %153 = vrot.lane.b32.xlu0 %v448_v16, %s384_s15  ;;  %151 = vrot.lane.b32.xlu1 %v446_v15, %s384_s15 }
  0xba   :  { %167 = vrot.lane.b32.xlu0 %v448_v16, %s385_s16  ;;  %165 = vrot.lane.b32.xlu1 %v446_v15, %s385_s16 }
 0x110   :  { %v67_v20 = vpop.permute.xlu0 %66  ;;  %v65_v21 = vpop.permute.xlu1 %64 }
 0x111   :  { %v71_v23 = vsel %vm70_vm2, %v65_v21, %v67_v20  ;;  %v72_v24 = vsel %vm70_vm2, %v67_v20, %v65_v21  ;;  %v174_v21 = vld [vmem:[#allocation3 + $0x88] sm:$0xff] }
 0x112   :  { %v75_v32 = vmul.f32 %v73_v22, %v72_v24  ;;  %v76_v34 = vmul.f32 %v74_v26, %v71_v23 }
 0x114   :  { %v82_v28 = vpop.permute.xlu0 %81  ;;  %v80_v29 = vpop.permute.xlu1 %79 }
 0x115   :  { %v84_v30 = vsel %vm83_vm3, %v80_v29, %v82_v28  ;;  %v85_v31 = vsel %vm83_vm3, %v82_v28, %v80_v29 }
 0x116   :  { %v89_v33 = vmul.f32 %v87_v25, %v85_v31  ;;  %v90_v35 = vmul.f32 %v88_v27, %v84_v30  ;;  %v173_v27 = vld [vmem:[#allocation3 + $0x80] sm:$0xff] }
 0x118   :  { %v96_v36 = vpop.permute.xlu0 %95  ;;  %v94_v37 = vpop.permute.xlu1 %93  ;;  %v295_v38 = vpack.c.bf16 %v90_v35, %v76_v34  ;;  %v297_v39 = vpack.c.bf16 %v89_v33, %v75_v32 }
 0x119   :  { %v98_v42 = vsel %vm97_vm4, %v94_v37, %v96_v36  ;;  %v99_v43 = vsel %vm97_vm4, %v96_v36, %v94_v37 }
 0x11a   :  { %296 = vmatprep.subr.bf16.mxu0 %v295_v38  ;;  %v103_v50 = vmul.f32 %v101_v40, %v99_v43  ;;  %v104_v51 = vmul.f32 %v102_v41, %v98_v42 }
 0x11b   :  { %298 = vmatpush1.bf16.msra.mxu0 %v297_v39 }
 0x11c   :  { %v110_v46 = vpop.permute.xlu0 %109  ;;  %v108_v47 = vpop.permute.xlu1 %107 }
 0x11d   :  { %v112_v48 = vsel %vm111_vm5, %v108_v47, %v110_v46  ;;  %v113_v49 = vsel %vm111_vm5, %v110_v46, %v108_v47 }
 0x11e   :  { %v117_v52 = vmul.f32 %v115_v44, %v113_v49  ;;  %v118_v53 = vmul.f32 %v116_v45, %v112_v48 }
 0x120   :  { %v126_v56 = vpop.permute.xlu0 %125  ;;  %v124_v57 = vpop.permute.xlu1 %123  ;;  %v299_v58 = vpack.c.bf16 %v118_v53, %v104_v51  ;;  %v301_v59 = vpack.c.bf16 %v117_v52, %v103_v50 }
 0x121   :  { %v128_v60 = vsel %vm127_vm6, %v124_v57, %v126_v56  ;;  %v129_v61 = vsel %vm127_vm6, %v126_v56, %v124_v57 }
 0x122   :  { %v133_v62 = vmul.f32 %v131_v54, %v128_v60  ;;  %v134_v63 = vmul.f32 %v132_v55, %v129_v61  ;;  %300 = vmatprep.subr.bf16.mxu0 %v299_v58 }
 0x123   :  { %302 = vmatpush1.bf16.msra.mxu0 %v301_v59 }
 0x124   :  { %v140_v0 = vpop.permute.xlu0 %139  ;;  %v138_v1 = vpop.permute.xlu1 %137  ;;  %v303_v2 = vpack.c.bf16 %v134_v63, %v448_v16  ;;  %v305_v3 = vpack.c.bf16 %v133_v62, %v446_v15 }
 0x125   :  { %v142_v8 = vsel %vm141_vm7, %v138_v1, %v140_v0  ;;  %v143_v9 = vsel %vm141_vm7, %v140_v0, %v138_v1 }
 0x126   :  { %304 = vmatprep.subr.bf16.mxu0 %v303_v2  ;;  %v147_v18 = vmul.f32 %v145_v4, %v142_v8  ;;  %v148_v16 = vmul.f32 %v146_v7, %v143_v9 }
 0x127   :  { %306 = vmatpush1.bf16.msra.mxu0 %v305_v3 }
 0x128   :  { %v154_v12 = vpop.permute.xlu0 %153  ;;  %v152_v13 = vpop.permute.xlu1 %151 }
 0x129   :  { %v156_v14 = vsel %vm155_vm8, %v152_v13, %v154_v12  ;;  %v157_v17 = vsel %vm155_vm8, %v154_v12, %v152_v13 }
 0x12a   :  { %v161_v20 = vmul.f32 %v159_v10, %v156_v14  ;;  %v162_v15 = vmul.f32 %v160_v11, %v157_v17 }
 0x12c   :  { %v168_v22 = vpop.permute.xlu0 %167  ;;  %v166_v23 = vpop.permute.xlu1 %165  ;;  %v307_v24 = vpack.c.bf16 %v162_v15, %v148_v16  ;;  %v309_v25 = vpack.c.bf16 %v161_v20, %v147_v18 }
 0x12d   :  { %v171_v26 = vsel %vm169_vm9, %v168_v22, %v166_v23  ;;  %v170_v28 = vsel %vm169_vm9, %v166_v23, %v168_v22 }
 0x12e   :  { %v176_v29 = vmul.f32 %v174_v21, %v171_v26  ;;  %308 = vmatprep.subr.bf16.mxu0 %v307_v24  ;;  %v175_v30 = vmul.f32 %v173_v27, %v170_v28 }
 0x12f   :  { %310 = vmatpush1.bf16.msra.mxu0 %v309_v25 }
 0x130   :  { %218 = vmatprep.subr.mxu0 %v176_v29 }
 0x133   :  { %219 = vmatpush1.msra.mxu0 %v175_v30 }
 0x134   :  { %294 = vmatmul.mubr.msk.f32.vlgmr.msra.gmra.mrb[0].mxu0 %vm198_vm10, %v179_v19 }
 0x207   :  { %v268_v31 = vpop.f32.mrb[0].mxu0 }
 0x208   :  { %v273_v32 = vadd.f32 %v268_v31, %v437_v5  ;;  %v270_v33 = vpop.f32.mrb[1].mxu0 }
 0x209   :  { %v274_v34 = vadd.f32 %v270_v33, %v442_v6 }
 0x20a   :  { %275 = vst [vmem:[#allocation6] sm:$0xff] %v273_v32 }
 0x20b   :  { %276 = vst [vmem:[#allocation6 + $0x8] sm:$0xff] %v274_v34 }
 0x20c   :  { %359 = shalt.err (!%p356_p12)
}
 0x20d   :  { %s360_s23 = scalar_lea.hbm %s501_s4, 256 }
 0x20e   :  { %p361_p13 = scmp.ne.s32.totalorder %s501_s4, %s360_s23  ;;  %p364_p0 = scmp.lt.u32.totalorder %s360_s23, %s501_s4 }
 0x210   :  { %p366_p1 = pnand %p364_p0, %p361_p13 }
 0x212   :  { %369 = shalt.err (!%p366_p1)
}
 0x213   :  { %286 = dma.vmem_to_hbm [thread:$0]  %s284_s20, 256, %s501_s4, [#allocation5]  }
 0x214   :  { %372 = dma.done.wait [#allocation5], 256  }
 0x215   :  { %373 = vsyncadd [#allocation5], 4294967040 }
 0x216   :  { %290 = vsyncpa [#allocation4], 1 }
 0x217   :  { %291 = vsyncpa [#allocation5], 1 }

</bundles_post_ra>
